<compile_context>
chip_gen: v7x
topology: tpu7x:2x2x1
jax: 0.10.0
libtpu: 0.0.40
codegen_flags: <defaults>
</compile_context>

<pallas_src>
import functools

import jax
import jax.numpy as jnp
from jax.experimental import pallas as pl
from jax.experimental.pallas import tpu as pltpu


def _round_up(x, m):
    return ((x + m - 1) // m) * m


def _linear_kernel(x_ref, w_ref, b_ref, o_ref, acc_ref, *, d_total, dk, mask_d):
    # x_ref: (TB, DK) batch/feature tile, w_ref: (1, DK), b_ref: (1,) f32 SMEM,
    # o_ref: (TB, 1) in the caller's dtype, acc_ref: (TB, 1) f32 scratch.
    k = pl.program_id(1)

    @pl.when(k == 0)
    def _init():
        acc_ref[...] = jnp.zeros_like(acc_ref)

    prod = x_ref[...].astype(jnp.float32) * w_ref[...].astype(jnp.float32)
    if mask_d:
        # Ragged last feature tile: zero columns past the true feature dim so
        # stale VMEM contents never leak into the reduction.
        col = jax.lax.broadcasted_iota(jnp.int32, prod.shape, 1)
        prod = jnp.where(col < (d_total - k * dk), prod, 0.0)
    acc_ref[...] += jnp.sum(prod, axis=-1, keepdims=True)

    @pl.when(k == pl.num_programs(1) - 1)
    def _finalize():
        o_ref[...] = (acc_ref[...] + b_ref[0]).astype(o_ref.dtype)


def linear_aesthetic_predictor(x, w, b, *, max_batch_tile=4096,
                               vmem_buffer_bytes=8 * 1024 * 1024):
    """y = x @ w.T + b with x: (B, D), w: (1, D) (or (D,)), b: (1,) -> (B, 1)."""
    B, D = x.shape
    orig_dtype = x.dtype
    itemsize = jnp.dtype(x.dtype).itemsize
    w = jnp.asarray(w).reshape(1, D)
    b = jnp.asarray(b).reshape(1).astype(jnp.float32)

    # Dtype-aware sublane alignment: 8 rows for 32-bit, 16 for bf16, 32 for 8-bit.
    sublane = max(8, 32 // itemsize)

    # ---- feature-dim tile ----------------------------------------------------
    # Common CLIP dims (512/768/1024) keep the whole row resident (nd == 1).
    # Only tile D when even a minimal (sublane, D) slab would blow the budget.
    if D * itemsize * sublane <= vmem_buffer_bytes:
        dk = D
    else:
        dk = (vmem_buffer_bytes // (512 * itemsize)) // 128 * 128
        dk = max(128, min(dk, D))
    nd = pl.cdiv(D, dk)
    mask_d = (D % dk) != 0

    # ---- batch tile ------------------------------------------------------------
    tb = max(vmem_buffer_bytes // (dk * itemsize), sublane)   # ~8 MiB per x buffer
    tb = min(tb, max_batch_tile)
    # v7x megacore: keep >= 2 grid steps along the parallel axis when possible.
    tb = min(tb, _round_up(pl.cdiv(B, 2), sublane))
    tb = max((tb // sublane) * sublane, sublane)
    if tb >= B:
        tb = B   # single full-batch block (full-dim block is always layout-legal)
    nb = pl.cdiv(B, tb)   # ragged last block handled by Pallas (no jnp.pad copy)

    kernel = functools.partial(_linear_kernel, d_total=D, dk=dk, mask_d=mask_d)

    # TODO(synk): a lane-dense (1, B) output (transpose partial sums onto the
    # 128-lane axis) would avoid masked width-1 stores; output bytes are ~1/D
    # of input here so the expected win is only a few percent.
    return pl.pallas_call(
        kernel,
        out_shape=jax.ShapeDtypeStruct((B, 1), orig_dtype),
        grid_spec=pltpu.PrefetchScalarGridSpec(
            num_scalar_prefetch=0,
            grid=(nb, nd),
            in_specs=[
                pl.BlockSpec((tb, dk), lambda i, k: (i, k)),        # x tile (streams)
                pl.BlockSpec((1, dk), lambda i, k: (0, k)),         # weight row
                pl.BlockSpec(memory_space=pltpu.MemorySpace.SMEM),  # bias scalar
            ],
            out_specs=pl.BlockSpec((tb, 1), lambda i, k: (i, 0)),
            scratch_shapes=[pltpu.VMEM((tb, 1), jnp.float32)],
        ),
        compiler_params=pltpu.CompilerParams(
            dimension_semantics=("parallel", "arbitrary"),
            vmem_limit_bytes=40 * 1024 * 1024,   # portable across v5e/v6e/v7x
        ),
    )(x, w, b)


if __name__ == "__main__":
    key = jax.random.PRNGKey(0)
    k_x, k_w, k_b = jax.random.split(key, 3)

    batch, input_dim = 8, 512  # CLIP image-embedding dim

    x = jax.random.normal(k_x, (batch, input_dim), dtype=jnp.float32)

    # Deterministic init mimicking nn.Linear default (uniform +/- 1/sqrt(in_dim)).
    bound = 1.0 / (input_dim ** 0.5)
    w = jax.random.uniform(k_w, (1, input_dim), jnp.float32, -bound, bound)
    b = jax.random.uniform(k_b, (1,), jnp.float32, -bound, bound)

    y = linear_aesthetic_predictor(x, w, b)
    y = jax.block_until_ready(y)

    y_ref = x @ w.T + b
    assert y.shape == (batch, 1)
    assert jnp.allclose(y, y_ref, atol=1e-5, rtol=1e-5)

    # Also exercise the ragged multi-tile batch path (non-multiple of the tile).
    x2 = jax.random.normal(key, (20, input_dim), dtype=jnp.float32)
    y2 = jax.block_until_ready(linear_aesthetic_predictor(x2, w, b))
    y2_ref = x2 @ w.T + b
    assert y2.shape == (20, 1)
    assert jnp.allclose(y2, y2_ref, atol=1e-5, rtol=1e-5)

    print("KERNEL_OK")
</pallas_src>

<mosaic_0001>
module attributes {stable_mosaic.version = 11 : i64} {
  func.func @_linear_kernel(%arg0: i32, %arg1: i32, %arg2: memref<8x512xf32, #tpu.memory_space<vmem>>, %arg3: memref<1x512xf32, #tpu.memory_space<vmem>>, %arg4: memref<1xf32, #tpu.memory_space<smem>>, %arg5: memref<8x1xf32, #tpu.memory_space<vmem>>, %arg6: memref<8x1xf32, #tpu.memory_space<vmem>>) attributes {dimension_semantics = [#tpu.dimension_semantics<parallel>, #tpu.dimension_semantics<arbitrary>], iteration_bounds = array<i64: 1, 1>, scalar_prefetch = 0 : i64, scratch_operands = 1 : i64, tpu.core_type = #tpu.core_type<tc>, window_params = [{transform_indices = @transform_0, window_bounds = array<i64: 8, 512>}, {transform_indices = @transform_1, window_bounds = array<i64: 1, 512>}, {transform_indices = @transform_2, window_bounds = array<i64: 1>}, {transform_indices = @transform_3, window_bounds = array<i64: 8, 1>}]} {
    %c0_i32 = arith.constant 0 : i32
    %0 = arith.cmpi eq, %arg1, %c0_i32 : i32
    %1 = arith.extui %0 : i1 to i32
    %c0_i32_0 = arith.constant 0 : i32
    %2 = arith.cmpi ne, %1, %c0_i32_0 : i32
    scf.if %2 {
      %cst_10 = arith.constant 0.000000e+00 : f32
      %15 = vector.broadcast %cst_10 : f32 to vector<8x1xf32>
      %c0_11 = arith.constant 0 : index
      %c0_12 = arith.constant 0 : index
      %16 = vector.load %arg6[%c0_11, %c0_12] : memref<8x1xf32, #tpu.memory_space<vmem>>, vector<8x1xf32>
      tpu.vector_store %arg6[%c0_11, %c0_12], %15 {strides = array<i32>} : memref<8x1xf32, #tpu.memory_space<vmem>>, vector<8x1xf32>,
    } else {
    }
    %c0 = arith.constant 0 : index
    %c0_1 = arith.constant 0 : index
    %3 = vector.load %arg2[%c0, %c0_1] : memref<8x512xf32, #tpu.memory_space<vmem>>, vector<8x512xf32>
    %c0_2 = arith.constant 0 : index
    %c0_3 = arith.constant 0 : index
    %4 = vector.load %arg3[%c0_2, %c0_3] : memref<1x512xf32, #tpu.memory_space<vmem>>, vector<1x512xf32>
    %5 = vector.broadcast %4 : vector<1x512xf32> to vector<8x512xf32>
    %6 = arith.mulf %3, %5 : vector<8x512xf32>
    %c0_4 = arith.constant 0 : index
    %c0_5 = arith.constant 0 : index
    %7 = vector.load %arg6[%c0_4, %c0_5] : memref<8x1xf32, #tpu.memory_space<vmem>>, vector<8x1xf32>
    %cst = arith.constant dense<0.000000e+00> : vector<8xf32>
    %8 = vector.multi_reduction <add>, %6, %cst [1] : vector<8x512xf32> to vector<8xf32>
    %9 = vector.shape_cast %8 : vector<8xf32> to vector<8x1xf32>
    %10 = arith.addf %7, %9 : vector<8x1xf32>
    %c0_6 = arith.constant 0 : index
    %c0_7 = arith.constant 0 : index
    %11 = vector.load %arg6[%c0_6, %c0_7] : memref<8x1xf32, #tpu.memory_space<vmem>>, vector<8x1xf32>
    tpu.vector_store %arg6[%c0_6, %c0_7], %10 {strides = array<i32>} : memref<8x1xf32, #tpu.memory_space<vmem>>, vector<8x1xf32>,
    %c0_i32_8 = arith.constant 0 : i32
    %12 = arith.cmpi eq, %arg1, %c0_i32_8 : i32
    %13 = arith.extui %12 : i1 to i32
    %c0_i32_9 = arith.constant 0 : i32
    %14 = arith.cmpi ne, %13, %c0_i32_9 : i32
    scf.if %14 {
      %c0_10 = arith.constant 0 : index
      %c0_11 = arith.constant 0 : index
      %15 = vector.load %arg6[%c0_10, %c0_11] : memref<8x1xf32, #tpu.memory_space<vmem>>, vector<8x1xf32>
      %c0_12 = arith.constant 0 : index
      %16 = memref.load %arg4[%c0_12] : memref<1xf32, #tpu.memory_space<smem>>
      %17 = vector.broadcast %16 : f32 to vector<8x1xf32>
      %18 = arith.addf %15, %17 : vector<8x1xf32>
      %c0_13 = arith.constant 0 : index
      %c0_14 = arith.constant 0 : index
      %19 = vector.load %arg5[%c0_13, %c0_14] : memref<8x1xf32, #tpu.memory_space<vmem>>, vector<8x1xf32>
      tpu.vector_store %arg5[%c0_13, %c0_14], %18 {strides = array<i32>} : memref<8x1xf32, #tpu.memory_space<vmem>>, vector<8x1xf32>,
    } else {
    }
    return
  }
  func.func @transform_0(%arg0: i32, %arg1: i32) -> (i32, i32) {
    %c0_i32 = arith.constant 0 : i32
    return %arg0, %arg1 : i32, i32
  }
  func.func @transform_1(%arg0: i32, %arg1: i32) -> (i32, i32) {
    %c0_i32 = arith.constant 0 : i32
    %c0_i32_0 = arith.constant 0 : i32
    return %c0_i32, %arg1 : i32, i32
  }
  func.func @transform_2(%arg0: i32, %arg1: i32) -> i32 {
    %c0_i32 = arith.constant 0 : i32
    %c0_i32_0 = arith.constant 0 : i32
    return %c0_i32 : i32
  }
  func.func @transform_3(%arg0: i32, %arg1: i32) -> (i32, i32) {
    %c0_i32 = arith.constant 0 : i32
    %c0_i32_0 = arith.constant 0 : i32
    return %arg0, %c0_i32 : i32, i32
  }
}

</mosaic_0001>

<bundles_post_ra>
// kernel: tpu_custom_call.1
= control target key start
LH: loop header
LB: loop body
LE: loop exit
PB: predicated region body
PF: predicated region fallthrough
CT: control target
= control target key end

     0   :  { %9 = vsyncpa [#allocation5], 0  ;;  %s111_s12 = smov [#allocation4]   ;;  %s157_s0 = inlined_call_operand.hbm [shape: f32[8,512], index: 0, kind: input, shape index: {}]   ;;  %s158_s1 = inlined_call_operand.vmem [shape: f32[1,512], index: 1, kind: input, shape index: {}]   ;;  %s159_s2 = inlined_call_operand.<no memory space> [shape: f32[1], index: 2, kind: input, shape index: {}]   ;;  %s160_s3 = inlined_call_operand.vmem [shape: f32[8,1], index: 3, kind: output, shape index: {}]  }
   0x1   :  { %s16_s13 = sshll.u32 %s111_s12, 4  ;;  %s87_s16 = scalar_lea.hbm %s157_s0, 512  ;;  %s17_s13 = int_to_ptr.vmem [resolvable:$true] %s16_s13 }
   0x2   :  { %p88_p0 = scmp.ne.s32.totalorder %s157_s0, %s87_s16  ;;  %p91_p1 = scmp.lt.u32.totalorder %s87_s16, %s157_s0 }
   0x4   :  { %p93_p2 = pnand %p91_p1, %p88_p0 }
   0x6   :  { %96 = shalt.err (!%p93_p2)
}
   0x7   :  { %s97_s21 = scalar_lea.vmem %s17_s13, 512  ;;  %p102_p4 = scmp.lt.s32.totalorder %s17_s13, %s17_s13 }
   0x8   :  { %p98_p3 = scmp.ne.s32.totalorder %s17_s13, %s97_s21  ;;  %p103_p5 = scmp.lt.s32.totalorder %s97_s21, %s97_s21 }
   0xa   :  { %p104_p6 = por %p103_p5, %p102_p4 }
   0xc   :  { %p105_p7 = pnand %p104_p6, %p98_p3 }
   0xe   :  { %108 = shalt.err (!%p105_p7)
}
   0xf   :  { %19 = dma.hbm_to_vmem [thread:$0]  %s157_s0, 512, %s17_s13, [#allocation5]  }
  0x10   :  { %109 = dma.done.wait [#allocation5], 512  }
  0x11   :  { %110 = vsyncadd [#allocation5], 4294966784  ;;  %v39_v0 = vlaneseq  ;;  %vm31_vm0 = vcmask 7168   ;;  %v112_v1 = vmov 0.0   ;;  %v33_v7 = vld [vmem:[#allocation4] sm:$0xff]  ;;  %v34_v8 = vld [vmem:[#allocation4 + $0x8] sm:$0xff]  ;;  %v77_v26 = vstv %s159_s2 }
  0x12   :  { %32 = vst.msk [vmem:[#allocation2] sm:$0xff] %vm31_vm0, %v112_v1  ;;  %v35_v9 = vld [vmem:[#allocation4 + $0x10] sm:$0xff]  ;;  %v37_v10 = vld [vmem:[%s158_s1] sm:$0xf] }
  0x13   :  { %v40_v2 = vshrl.u32 %v39_v0, 7  ;;  %v36_v15 = vld [vmem:[#allocation4 + $0x18] sm:$0xff] }
  0x15   :  { %v41_v3 = vsub.s32 0, %v40_v2  ;;  %v45_v4 = vsub.s32 1, %v40_v2  ;;  %v49_v5 = vsub.s32 2, %v40_v2  ;;  %v53_v6 = vsub.s32 3, %v40_v2 }
  0x17   :  { %v42_v11 = vrot.slane %v37_v10, %v41_v3  ;;  %v46_v12 = vrot.slane %v37_v10, %v45_v4  ;;  %v50_v13 = vrot.slane %v37_v10, %v49_v5  ;;  %v54_v14 = vrot.slane %v37_v10, %v53_v6 }
  0x19   :  { %v59_v16 = vmul.f32 %v42_v11, %v33_v7  ;;  %v60_v17 = vmul.f32 %v46_v12, %v34_v8  ;;  %v61_v18 = vmul.f32 %v50_v13, %v35_v9  ;;  %v62_v19 = vmul.f32 %v54_v14, %v36_v15  ;;  %v63_v23 = vld [vmem:[#allocation2] sm:$0xff] }
  0x1b   :  { %v64_v20 = vadd.f32 %v60_v17, %v59_v16 }
  0x1d   :  { %v65_v21 = vadd.f32 %v64_v20, %v61_v18 }
  0x1f   :  { %v66_v22 = vadd.f32 %v65_v21, %v62_v19 }
  0x21   :  { %67 = vadd.xlane.f32.xlu0 %v66_v22 }
  0xae   :  { %v68_v24 = vpop.xlane.xlu0 %67 }
  0xaf   :  { %v69_v25 = vadd.f32 %v68_v24, %v63_v23 }
  0xb1   :  { %71 = vst.msk [vmem:[#allocation2] sm:$0xff] %vm31_vm0, %v69_v25 }
  0xb8   :  { %v75_v27 = vld [vmem:[#allocation2] sm:$0xff] }
  0xb9   :  { %v78_v28 = vadd.f32 %v77_v26, %v75_v27 }
  0xbb   :  { %79 = vst.msk [vmem:[%s160_s3] sm:$0xff] %vm31_vm0, %v78_v28 }
  0xbc   :  { %84 = vsyncpa [#allocation5], 1 }

</bundles_post_ra>
